<compile_context>
chip_gen: v5e
topology: v5e:2x2
jax: 0.10.0
libtpu: 0.0.40
codegen_flags: <defaults>
</compile_context>

<pallas_src>
import math
import functools

import jax
import jax.numpy as jnp
from jax.experimental import pallas as pl
from jax.experimental.pallas import tpu as pltpu


def _ptanh_kernel(m_ref, v_ref, o_ref, *, fixed_b, compute_dtype):
    # m_ref: (1, L)  exp(log_m) pre-tiled to lane width, broadcast over rows
    # v_ref/o_ref: (tile_rows, L)
    v = v_ref[...].astype(compute_dtype)
    m = m_ref[...]  # already stored in compute_dtype
    y = (jnp.tanh(m * (v - fixed_b)) + 1.0) * 0.5
    o_ref[...] = y.astype(o_ref.dtype)


def _cdiv(a, b):
    return -(-a // b)


def _round_up(x, n):
    return _cdiv(x, n) * n


@functools.lru_cache(maxsize=None)
def _tpu_config():
    """Returns (target_block_bytes, vmem_limit_bytes, num_tensorcores)."""
    block_bytes = 4 << 20       # within the recommended range for all gens
    vmem_limit = 48 << 20
    num_cores = 1
    try:
        vmem_phys = pltpu.get_tpu_info().vmem_capacity_bytes
        if vmem_phys <= (64 << 20):
            # v7x: 64 MiB VMEM per TC, 2 TensorCores per chip.
            block_bytes, vmem_limit, num_cores = 4 << 20, 32 << 20, 2
        else:
            # v5e / v6e: 128 MiB VMEM, 1 TensorCore.
            block_bytes, vmem_limit, num_cores = 4 << 20, 48 << 20, 1
    except Exception:
        pass
    return block_bytes, vmem_limit, num_cores


def parametric_tanh_only_m(V, log_m, fixed_b=0.5, *, low_precision_ok=True,
                           block_bytes=None):
    """V: (..., D) array; log_m: (D,) parameter vector."""
    orig_shape = V.shape
    D = orig_shape[-1]
    assert log_m.shape == (D,)
    out_dtype = V.dtype

    compute_dtype = (jnp.bfloat16
                     if (low_precision_ok and out_dtype == jnp.bfloat16)
                     else jnp.float32)

    # Hoist exp(log_m) out of the kernel (tiny (D,) op, done once).
    m = jnp.exp(log_m.astype(jnp.float32)).astype(compute_dtype)

    B = 1
    for s in orig_shape[:-1]:
        B *= s
    total = B * D

    # Lane-dense slab of width L: L is a multiple of 128 (unmasked full-width
    # vst) and of D (so m tiled L//D times lines up with the flat layout).
    L = D if D % 128 == 0 else (D * 128) // math.gcd(D, 128)
    # Widen L (a free contiguous reshape) as long as it introduces no padding.
    while L < 1024 and total % (2 * L) == 0:
        L *= 2
    rep = L // D
    pad = (-total) % L
    rows = (total + pad) // L

    itemsize = jnp.dtype(out_dtype).itemsize
    sub = 8 if itemsize >= 4 else (16 if itemsize == 2 else 32)
    row_bytes = L * itemsize

    cfg_block_bytes, vmem_limit, num_cores = _tpu_config()
    if block_bytes is None:
        block_bytes = cfg_block_bytes

    tile_rows = max(sub, (block_bytes // row_bytes) // sub * sub)
    if rows <= tile_rows:
        tile_rows = rows                         # single full-array block
    elif num_cores > 1:
        # Dual-TC chips (v7x): even step count, >= 3 steps per core when there
        # is enough data, but never shrink blocks below ~1 MiB.
        steps = _cdiv(rows, tile_rows)
        steps = _round_up(max(steps, 3 * num_cores), num_cores)
        min_tile = max(sub, ((1 << 20) // row_bytes) // sub * sub)
        tile_rows = min(tile_rows,
                        max(min_tile, _round_up(_cdiv(rows, steps), sub)))
    grid = (_cdiv(rows, tile_rows),)  # ragged last block: reads padded, writes masked

    flat = V.reshape(-1)
    if pad:
        # Only hit when (batch*D) % L != 0; allow_input_fusion below lets XLA
        # fuse this pad into the pallas_call operand instead of materializing.
        flat = jnp.pad(flat, (0, pad))
    V2 = flat.reshape(rows, L)
    m_tiled = (jnp.tile(m, rep) if rep > 1 else m).reshape(1, L)

    kernel = functools.partial(_ptanh_kernel, fixed_b=float(fixed_b),
                               compute_dtype=compute_dtype)

    vmem_needed = (4 * tile_rows * row_bytes
                   + 2 * L * jnp.dtype(compute_dtype).itemsize)
    out2 = pl.pallas_call(
        kernel,
        out_shape=jax.ShapeDtypeStruct((rows, L), out_dtype),
        grid_spec=pltpu.PrefetchScalarGridSpec(
            num_scalar_prefetch=0,
            grid=grid,
            in_specs=[
                pl.BlockSpec((1, L), lambda i: (0, 0)),          # m (resident)
                pl.BlockSpec((tile_rows, L), lambda i: (i, 0)),  # V slab
            ],
            out_specs=pl.BlockSpec((tile_rows, L), lambda i: (i, 0)),
        ),
        compiler_params=pltpu.CompilerParams(
            dimension_semantics=("parallel",),
            vmem_limit_bytes=max(vmem_limit, vmem_needed + (2 << 20)),
            allow_input_fusion=[False, True],
        ),
        cost_estimate=pl.CostEstimate(
            flops=4 * rows * L,
            transcendentals=rows * L,
            bytes_accessed=2 * rows * L * itemsize
                           + L * jnp.dtype(compute_dtype).itemsize,
        ),
    )(m_tiled, V2)

    if pad:
        return out2.reshape(-1)[:total].reshape(orig_shape)
    return out2.reshape(orig_shape)


def parametric_tanh_only_m_ref(V, log_m, fixed_b=0.5):
    m = jnp.exp(log_m.astype(jnp.float32))
    y = (jnp.tanh(m * (V.astype(jnp.float32) - fixed_b)) + 1.0) / 2.0
    return y.astype(V.dtype)


if __name__ == "__main__":
    # Module config (deterministic init, matches nn.Module __init__ semantics)
    output_dim = 32
    init_m = 1.5
    fixed_b = 0.5
    log_m = jnp.full((output_dim,), math.log(init_m), dtype=jnp.float32)

    key = jax.random.PRNGKey(0)
    k1, k2, k3 = jax.random.split(key, 3)

    # Primary case: batch=8, hidden=output_dim=32 (lane-dense repack, no pad,
    # no output slice -> zero extra HBM passes).
    V = jax.random.normal(k1, (8, output_dim), dtype=jnp.float32)
    out = jax.block_until_ready(parametric_tanh_only_m(V, log_m, fixed_b))
    ref = parametric_tanh_only_m_ref(V, log_m, fixed_b)
    assert out.shape == ref.shape and out.dtype == ref.dtype
    assert jnp.allclose(out, ref, atol=1e-5, rtol=1e-5)

    # Ragged / odd-D case: exercises the minimal (lane-row boundary) pad path.
    output_dim2 = 48
    log_m2 = jnp.full((output_dim2,), math.log(init_m), dtype=jnp.float32)
    V2 = jax.random.normal(k2, (7, output_dim2), dtype=jnp.float32)
    out2 = jax.block_until_ready(parametric_tanh_only_m(V2, log_m2, fixed_b))
    ref2 = parametric_tanh_only_m_ref(V2, log_m2, fixed_b)
    assert out2.shape == ref2.shape
    assert jnp.allclose(out2, ref2, atol=1e-5, rtol=1e-5)

    # Multi-step grid with a ragged (clipped) last block: small block override
    # forces several blocks + masked trailing writes on a small input.
    output_dim3 = 256
    log_m3 = jnp.full((output_dim3,), math.log(init_m), dtype=jnp.float32)
    V3 = jax.random.normal(k3, (41, output_dim3), dtype=jnp.float32)
    out3 = jax.block_until_ready(
        parametric_tanh_only_m(V3, log_m3, fixed_b, block_bytes=16 * 1024))
    ref3 = parametric_tanh_only_m_ref(V3, log_m3, fixed_b)
    assert out3.shape == ref3.shape
    assert jnp.allclose(out3, ref3, atol=1e-5, rtol=1e-5)

    # TODO(synk): register_full_backward_hook / scale_activation_grad_hook is
    # training-only autograd plumbing and is not part of the forward kernel.
    print("KERNEL_OK")
</pallas_src>

<mosaic_0001>
module attributes {stable_mosaic.version = 11 : i64} {
  func.func @_ptanh_kernel(%arg0: i32, %arg1: memref<1x256xf32, #tpu.memory_space<vmem>>, %arg2: memref<1x256xf32, #tpu.memory_space<vmem>>, %arg3: memref<1x256xf32, #tpu.memory_space<vmem>>) attributes {dimension_semantics = [#tpu.dimension_semantics<parallel>], iteration_bounds = array<i64: 1>, scalar_prefetch = 0 : i64, scratch_operands = 0 : i64, tpu.core_type = #tpu.core_type<tc>, window_params = [{pipeline_mode = #tpu.pipeline_mode<synchronous>, transform_indices = @transform_0, window_bounds = array<i64: 1, 256>}, {transform_indices = @transform_1, window_bounds = array<i64: 1, 256>}, {transform_indices = @transform_2, window_bounds = array<i64: 1, 256>}]} {
    %c0 = arith.constant 0 : index
    %c0_0 = arith.constant 0 : index
    %0 = vector.load %arg2[%c0, %c0_0] : memref<1x256xf32, #tpu.memory_space<vmem>>, vector<1x256xf32>
    %c0_1 = arith.constant 0 : index
    %c0_2 = arith.constant 0 : index
    %1 = vector.load %arg1[%c0_1, %c0_2] : memref<1x256xf32, #tpu.memory_space<vmem>>, vector<1x256xf32>
    %cst = arith.constant 5.000000e-01 : f32
    %2 = vector.broadcast %cst : f32 to vector<1x256xf32>
    %3 = arith.subf %0, %2 : vector<1x256xf32>
    %4 = arith.mulf %1, %3 : vector<1x256xf32>
    %5 = math.tanh %4 : vector<1x256xf32>
    %cst_3 = arith.constant 1.000000e+00 : f32
    %6 = vector.broadcast %cst_3 : f32 to vector<1x256xf32>
    %7 = arith.addf %5, %6 : vector<1x256xf32>
    %cst_4 = arith.constant 5.000000e-01 : f32
    %8 = vector.broadcast %cst_4 : f32 to vector<1x256xf32>
    %9 = arith.mulf %7, %8 : vector<1x256xf32>
    %c0_5 = arith.constant 0 : index
    %c0_6 = arith.constant 0 : index
    %10 = vector.load %arg3[%c0_5, %c0_6] : memref<1x256xf32, #tpu.memory_space<vmem>>, vector<1x256xf32>
    tpu.vector_store %arg3[%c0_5, %c0_6], %9 {strides = array<i32>} : memref<1x256xf32, #tpu.memory_space<vmem>>, vector<1x256xf32>,
    return
  }
  func.func @transform_0(%arg0: i32) -> (i32, i32) {
    %c0_i32 = arith.constant 0 : i32
    %c0_i32_0 = arith.constant 0 : i32
    %c0_i32_1 = arith.constant 0 : i32
    return %c0_i32, %c0_i32_0 : i32, i32
  }
  func.func @transform_1(%arg0: i32) -> (i32, i32) {
    %c0_i32 = arith.constant 0 : i32
    %c0_i32_0 = arith.constant 0 : i32
    return %arg0, %c0_i32 : i32, i32
  }
  func.func @transform_2(%arg0: i32) -> (i32, i32) {
    %c0_i32 = arith.constant 0 : i32
    %c0_i32_0 = arith.constant 0 : i32
    return %arg0, %c0_i32 : i32, i32
  }
}

</mosaic_0001>

<bundles_post_ra>
// kernel: tpu_custom_call.1
= control target key start
LH: loop header
LB: loop body
LE: loop exit
PB: predicated region body
PF: predicated region fallthrough
CT: control target
= control target key end

     0   :  { %7 = vsyncpa [#allocation3], 0  ;;  %s181_s0 = inlined_call_operand.hbm [shape: f32[1,256], index: 0, kind: input, shape index: {}]   ;;  %s182_s1 = inlined_call_operand.hbm [shape: f32[1,256], index: 1, kind: input, shape index: {}]   ;;  %s183_s2 = inlined_call_operand.hbm [shape: f32[1,256], index: 2, kind: output, shape index: {}]  }
   0x1   :  { %8 = vsyncpa [#allocation6], 0 }
   0x2   :  { %9 = vsyncpa [#allocation4], 0  ;;  %s15_s11 = sshll.u32 %s181_s0, 4  ;;  %s154_s12 = smov [#allocation2]   ;;  %s16_s11 = int_to_ptr.hbm [resolvable:$true] %s15_s11 }
   0x3   :  { %s17_s13 = sshll.u32 %s154_s12, 4  ;;  %s26_s16 = sshll.u32 %s182_s1, 4  ;;  %s18_s13 = int_to_ptr.vmem [resolvable:$true] %s17_s13  ;;  %s27_s16 = int_to_ptr.hbm [resolvable:$true] %s26_s16 }
   0x4   :  { %20 = dma.hbm_to_vmem [thread:$0]  %s16_s11, 32, %s18_s13, [#allocation3]  }
   0x5   :  { %s155_s17 = smov [#allocation5]  }
   0x6   :  { %s28_s18 = sshll.u32 %s155_s17, 4  ;;  %s29_s18 = int_to_ptr.vmem [resolvable:$true] %s28_s18 }
   0x7   :  { %31 = dma.hbm_to_vmem [thread:$0]  %s27_s16, 32, %s29_s18, [#allocation6]  }
   0x8   :  { %148 = dma.done.wait [#allocation3], 32  }
   0x9   :  { %149 = vsyncadd [#allocation3], 4294967264 }
   0xa   :  { %150 = dma.done.wait [#allocation6], 32  }
   0xb   :  { %151 = vsyncadd [#allocation6], 4294967264  ;;  %v40_v0 = vld [vmem:[#allocation5] sm:$0x3]  ;;  %v41_v1 = vld [vmem:[#allocation2] sm:$0x3]  ;;  %v47_v4 = vlaneseq }
   0xc   :  { %v70_v2 = vadd.f32 -0.5, %v40_v0  ;;  %s156_s0 = smov [#allocation7]   ;;  %s59_s21 = sshll.u32 %s183_s2, 4  ;;  %s60_s21 = int_to_ptr.hbm [resolvable:$true] %s59_s21 }
   0xd   :  { %s57_s19 = sshll.u32 %s156_s0, 4  ;;  %vm49_vm0 = vcmp.lt.s32.totalorder %v47_v4, 256  ;;  %s58_s19 = int_to_ptr.vmem [resolvable:$true] %s57_s19 }
   0xe   :  { %v43_v3 = vmul.f32 %v70_v2, %v41_v1 }
  0x10   :  { %74 = vtanh.f32 %v43_v3 }
  0x16   :  { %v75_v5 = vpop.eup %74 }
  0x17   :  { %v45_v6 = vadd.f32 1.0, %v75_v5 }
  0x19   :  { %v46_v7 = vmul.f32 0.5, %v45_v6 }
  0x1b   :  { %51 = vst.msk [vmem:[#allocation7] sm:$0x3] %vm49_vm0, %v46_v7 }
  0x1c   :  { %62 = dma.vmem_to_hbm [thread:$0]  %s58_s19, 32, %s60_s21, [#allocation4]  }
  0x1d   :  { %152 = dma.done.wait [#allocation4], 32  }
  0x1e   :  { %153 = vsyncadd [#allocation4], 4294967264 }
  0x1f   :  { %67 = vsyncpa [#allocation3], 1 }
  0x20   :  { %68 = vsyncpa [#allocation6], 1 }
  0x21   :  { %69 = vsyncpa [#allocation4], 1 }

</bundles_post_ra>
